<compile_context>
chip_gen: v5e
topology: v5e:2x2
jax: 0.10.0
libtpu: 0.0.40
codegen_flags: <defaults>
</compile_context>

<pallas_src>
import functools
import math

import jax
import jax.numpy as jnp
from jax.experimental import pallas as pl
from jax.experimental.pallas import tpu as pltpu


def _round_up(x, m):
    return ((x + m - 1) // m) * m


def _pick_vmem_limit():
    """Generation-aware scoped-VMEM limit: ~3/4 of capacity, capped at 100 MiB."""
    try:
        cap = pltpu.get_tpu_info().vmem_capacity_bytes
    except Exception:  # unknown chip / API unavailable: conservative default
        cap = 64 * 1024 * 1024
    return int(min(100 * 1024 * 1024, cap * 3 // 4))


def _fused_mlp_kernel(x_ref, *refs):
    """y = (((x W0 + b0) W1 + b1) ... ) W_{L-1} + b_{L-1} on padded tiles.

    x_ref:  (TILE_M, K0_pad) f32
    refs:   w0 (K0_pad, H_pad) bf16, b0 (1, H_pad) bf16, w1, b1, ...,
            o_ref (TILE_M, OUT_pad) f32
    Zero padding is exact: padded input columns, padded weight rows and padded
    bias columns are all 0, so padded output columns stay 0 through the chain.
    """
    o_ref = refs[-1]
    wb_refs = refs[:-1]
    num_layers = len(wb_refs) // 2

    act = x_ref[...]                                    # f32 activation carry
    for layer in range(num_layers):                     # static unrolled loop
        w_ref = wb_refs[2 * layer]                      # (K_pad, N_pad) bf16
        b_ref = wb_refs[2 * layer + 1]                  # (1, N_pad)     bf16
        # bf16 MXU operands, f32 accumulate; bias promoted to f32 by the add.
        act = jnp.dot(act.astype(jnp.bfloat16), w_ref[...],
                      preferred_element_type=jnp.float32) + b_ref[...]
    o_ref[...] = act.astype(o_ref.dtype)


def fused_mlp_pallas(x, packed_params, *, out_N, tile_m=256):
    """Run the whole LinearNet forward in one pallas_call.

    x:             (M, in_N) f32, unpadded
    packed_params: list of (w_padded (K_pad, N_pad) bf16, b_padded (1, N_pad) bf16)
                   with w_padded[:fi, :fo] = W.T and zeros elsewhere
    returns:       (M, out_N) f32
    """
    M, in_N = x.shape
    K0 = packed_params[0][0].shape[0]      # padded input feature dim
    OUT = packed_params[-1][0].shape[1]    # padded output feature dim

    # M tile: multiple of 16 sublanes (bf16 packing), capped at 256 rows.
    tm = _round_up(min(tile_m, _round_up(M, 16)), 16)
    M_pad = _round_up(M, tm)
    num_m_tiles = M_pad // tm

    # Zero-pad the input once (batch to tile multiple, features to K0 lanes).
    x_pad = jnp.zeros((M_pad, K0), x.dtype).at[:M, :in_N].set(x)

    in_specs = [pl.BlockSpec((tm, K0), lambda i: (i, 0))]
    flat_args = [x_pad]
    for (w, b) in packed_params:
        # Full-array blocks with constant index maps: fetched once, resident
        # across all M tiles (no per-tile re-DMA).
        in_specs.append(pl.BlockSpec(w.shape, lambda i: (0, 0)))
        in_specs.append(pl.BlockSpec(b.shape, lambda i: (0, 0)))
        flat_args += [w, b]

    y_pad = pl.pallas_call(
        _fused_mlp_kernel,
        out_shape=jax.ShapeDtypeStruct((M_pad, OUT), x.dtype),
        grid=(num_m_tiles,),
        in_specs=in_specs,
        out_specs=pl.BlockSpec((tm, OUT), lambda i: (i, 0)),
        compiler_params=pltpu.CompilerParams(
            dimension_semantics=("parallel",),          # M tiles are independent
            vmem_limit_bytes=_pick_vmem_limit(),
        ),
    )(*flat_args)

    return y_pad[:M, :out_N]


# ---------------------------------------------------------------------------
# Parameter construction (PyTorch nn.Linear-style init), done once, on host.
# ---------------------------------------------------------------------------
def init_linear_params(key, in_features, out_features, dtype=jnp.float32):
    """PyTorch default init: U(-1/sqrt(fan_in), 1/sqrt(fan_in))."""
    kw, kb = jax.random.split(key)
    bound = 1.0 / math.sqrt(in_features)
    w = jax.random.uniform(kw, (out_features, in_features), dtype,
                           minval=-bound, maxval=bound)
    b = jax.random.uniform(kb, (out_features,), dtype,
                           minval=-bound, maxval=bound)
    return w, b


def make_linear_net_params(key, in_N, out_N, width, depth):
    """Matches LinearNet.__init__: layer_in, depth x hidden, layer_out."""
    dims = [(in_N, width)] + [(width, width)] * depth + [(width, out_N)]
    params = []
    for (fi, fo) in dims:
        key, sub = jax.random.split(key)
        params.append(init_linear_params(sub, fi, fo))
    return params


def pack_linear_net_params(params, lane=128):
    """Pre-transpose, zero-pad (per layer!) and cast to bf16, ONCE.

    Each layer gets its own padded (K_pad, N_pad) = (round_up(fi,128),
    round_up(fo,128)) weight and (1, N_pad) bias; padded entries are zero.
    """
    packed = []
    for (w, b) in params:
        fo, fi = w.shape
        k_pad = _round_up(fi, lane)
        n_pad = _round_up(fo, lane)
        wp = jnp.zeros((k_pad, n_pad), jnp.bfloat16)
        wp = wp.at[:fi, :fo].set(w.T.astype(jnp.bfloat16))
        bp = jnp.zeros((1, n_pad), jnp.bfloat16)
        bp = bp.at[0, :fo].set(b.astype(jnp.bfloat16))
        packed.append((wp, bp))
    return packed


if __name__ == "__main__":
    # LinearNet(in_N=4, out_N=2, width=32, depth=2); batch of 8 samples.
    in_N, out_N, width, depth = 4, 2, 32, 2
    batch = 8

    key = jax.random.PRNGKey(0)
    k_x, k_p = jax.random.split(key)
    x = jax.random.normal(k_x, (batch, in_N), dtype=jnp.float32)

    params = make_linear_net_params(k_p, in_N, out_N, width, depth)
    packed = pack_linear_net_params(params)             # done once, bf16

    fwd = jax.jit(functools.partial(fused_mlp_pallas, out_N=out_N))
    out = fwd(x, packed)
    jax.block_until_ready(out)
    assert out.shape == (batch, out_N)

    # Reference 1: same mixed-precision recipe (bf16 operands, f32 accumulate).
    ref_bf = x
    for (w, b) in params:
        ref_bf = jnp.dot(ref_bf.astype(jnp.bfloat16), w.T.astype(jnp.bfloat16),
                         preferred_element_type=jnp.float32) + b.astype(jnp.bfloat16)
    # Reference 2: full f32 forward (bf16 weights => loosened tolerance).
    ref_f32 = x
    for (w, b) in params:
        ref_f32 = ref_f32 @ w.T + b

    err_bf = float(jnp.max(jnp.abs(out - ref_bf)))
    err_f32 = float(jnp.max(jnp.abs(out - ref_f32)))
    assert jnp.allclose(out, ref_bf, atol=5e-3, rtol=2e-2), \
        f"mismatch vs bf16-matched reference, max abs err {err_bf}"
    assert jnp.allclose(out, ref_f32, atol=1e-1, rtol=1e-1), \
        f"mismatch vs f32 reference, max abs err {err_f32}"

    print("KERNEL_OK")
</pallas_src>

<mosaic_0001>
module attributes {stable_mosaic.version = 11 : i64} {
  func.func @_fused_mlp_kernel(%arg0: i32, %arg1: memref<16x128xf32, #tpu.memory_space<vmem>>, %arg2: memref<128x128xbf16, #tpu.memory_space<vmem>>, %arg3: memref<1x128xbf16, #tpu.memory_space<vmem>>, %arg4: memref<128x128xbf16, #tpu.memory_space<vmem>>, %arg5: memref<1x128xbf16, #tpu.memory_space<vmem>>, %arg6: memref<128x128xbf16, #tpu.memory_space<vmem>>, %arg7: memref<1x128xbf16, #tpu.memory_space<vmem>>, %arg8: memref<128x128xbf16, #tpu.memory_space<vmem>>, %arg9: memref<1x128xbf16, #tpu.memory_space<vmem>>, %arg10: memref<16x128xf32, #tpu.memory_space<vmem>>) attributes {dimension_semantics = [#tpu.dimension_semantics<parallel>], iteration_bounds = array<i64: 1>, scalar_prefetch = 0 : i64, scratch_operands = 0 : i64, tpu.core_type = #tpu.core_type<tc>, window_params = [{transform_indices = @transform_0, window_bounds = array<i64: 16, 128>}, {pipeline_mode = #tpu.pipeline_mode<synchronous>, transform_indices = @transform_1, window_bounds = array<i64: 128, 128>}, {pipeline_mode = #tpu.pipeline_mode<synchronous>, transform_indices = @transform_2, window_bounds = array<i64: 1, 128>}, {pipeline_mode = #tpu.pipeline_mode<synchronous>, transform_indices = @transform_3, window_bounds = array<i64: 128, 128>}, {pipeline_mode = #tpu.pipeline_mode<synchronous>, transform_indices = @transform_4, window_bounds = array<i64: 1, 128>}, {pipeline_mode = #tpu.pipeline_mode<synchronous>, transform_indices = @transform_5, window_bounds = array<i64: 128, 128>}, {pipeline_mode = #tpu.pipeline_mode<synchronous>, transform_indices = @transform_6, window_bounds = array<i64: 1, 128>}, {pipeline_mode = #tpu.pipeline_mode<synchronous>, transform_indices = @transform_7, window_bounds = array<i64: 128, 128>}, {pipeline_mode = #tpu.pipeline_mode<synchronous>, transform_indices = @transform_8, window_bounds = array<i64: 1, 128>}, {transform_indices = @transform_9, window_bounds = array<i64: 16, 128>}]} {
    %c0 = arith.constant 0 : index
    %c0_0 = arith.constant 0 : index
    %0 = vector.load %arg1[%c0, %c0_0] : memref<16x128xf32, #tpu.memory_space<vmem>>, vector<16x128xf32>
    %1 = arith.truncf %0 : vector<16x128xf32> to vector<16x128xbf16>
    %c0_1 = arith.constant 0 : index
    %c0_2 = arith.constant 0 : index
    %2 = vector.load %arg2[%c0_1, %c0_2] : memref<128x128xbf16, #tpu.memory_space<vmem>>, vector<128x128xbf16>
    %cst = arith.constant dense<0.000000e+00> : vector<16x128xf32>
    %3 = tpu.matmul %1, %2, %cst {dimension_numbers = #tpu.dot_dimension_numbers<[1], [0], [0], [1], [0, 0, 1, 1], [], []>} : vector<16x128xbf16>, vector<128x128xbf16>, vector<16x128xf32> -> vector<16x128xf32>
    %c0_3 = arith.constant 0 : index
    %c0_4 = arith.constant 0 : index
    %4 = vector.load %arg3[%c0_3, %c0_4] : memref<1x128xbf16, #tpu.memory_space<vmem>>, vector<1x128xbf16>
    %5 = arith.extf %4 : vector<1x128xbf16> to vector<1x128xf32>
    %6 = vector.broadcast %5 : vector<1x128xf32> to vector<16x128xf32>
    %7 = arith.addf %3, %6 : vector<16x128xf32>
    %8 = arith.truncf %7 : vector<16x128xf32> to vector<16x128xbf16>
    %c0_5 = arith.constant 0 : index
    %c0_6 = arith.constant 0 : index
    %9 = vector.load %arg4[%c0_5, %c0_6] : memref<128x128xbf16, #tpu.memory_space<vmem>>, vector<128x128xbf16>
    %cst_7 = arith.constant dense<0.000000e+00> : vector<16x128xf32>
    %10 = tpu.matmul %8, %9, %cst_7 {dimension_numbers = #tpu.dot_dimension_numbers<[1], [0], [0], [1], [0, 0, 1, 1], [], []>} : vector<16x128xbf16>, vector<128x128xbf16>, vector<16x128xf32> -> vector<16x128xf32>
    %c0_8 = arith.constant 0 : index
    %c0_9 = arith.constant 0 : index
    %11 = vector.load %arg5[%c0_8, %c0_9] : memref<1x128xbf16, #tpu.memory_space<vmem>>, vector<1x128xbf16>
    %12 = arith.extf %11 : vector<1x128xbf16> to vector<1x128xf32>
    %13 = vector.broadcast %12 : vector<1x128xf32> to vector<16x128xf32>
    %14 = arith.addf %10, %13 : vector<16x128xf32>
    %15 = arith.truncf %14 : vector<16x128xf32> to vector<16x128xbf16>
    %c0_10 = arith.constant 0 : index
    %c0_11 = arith.constant 0 : index
    %16 = vector.load %arg6[%c0_10, %c0_11] : memref<128x128xbf16, #tpu.memory_space<vmem>>, vector<128x128xbf16>
    %cst_12 = arith.constant dense<0.000000e+00> : vector<16x128xf32>
    %17 = tpu.matmul %15, %16, %cst_12 {dimension_numbers = #tpu.dot_dimension_numbers<[1], [0], [0], [1], [0, 0, 1, 1], [], []>} : vector<16x128xbf16>, vector<128x128xbf16>, vector<16x128xf32> -> vector<16x128xf32>
    %c0_13 = arith.constant 0 : index
    %c0_14 = arith.constant 0 : index
    %18 = vector.load %arg7[%c0_13, %c0_14] : memref<1x128xbf16, #tpu.memory_space<vmem>>, vector<1x128xbf16>
    %19 = arith.extf %18 : vector<1x128xbf16> to vector<1x128xf32>
    %20 = vector.broadcast %19 : vector<1x128xf32> to vector<16x128xf32>
    %21 = arith.addf %17, %20 : vector<16x128xf32>
    %22 = arith.truncf %21 : vector<16x128xf32> to vector<16x128xbf16>
    %c0_15 = arith.constant 0 : index
    %c0_16 = arith.constant 0 : index
    %23 = vector.load %arg8[%c0_15, %c0_16] : memref<128x128xbf16, #tpu.memory_space<vmem>>, vector<128x128xbf16>
    %cst_17 = arith.constant dense<0.000000e+00> : vector<16x128xf32>
    %24 = tpu.matmul %22, %23, %cst_17 {dimension_numbers = #tpu.dot_dimension_numbers<[1], [0], [0], [1], [0, 0, 1, 1], [], []>} : vector<16x128xbf16>, vector<128x128xbf16>, vector<16x128xf32> -> vector<16x128xf32>
    %c0_18 = arith.constant 0 : index
    %c0_19 = arith.constant 0 : index
    %25 = vector.load %arg9[%c0_18, %c0_19] : memref<1x128xbf16, #tpu.memory_space<vmem>>, vector<1x128xbf16>
    %26 = arith.extf %25 : vector<1x128xbf16> to vector<1x128xf32>
    %27 = vector.broadcast %26 : vector<1x128xf32> to vector<16x128xf32>
    %28 = arith.addf %24, %27 : vector<16x128xf32>
    %c0_20 = arith.constant 0 : index
    %c0_21 = arith.constant 0 : index
    %29 = vector.load %arg10[%c0_20, %c0_21] : memref<16x128xf32, #tpu.memory_space<vmem>>, vector<16x128xf32>
    tpu.vector_store %arg10[%c0_20, %c0_21], %28 {strides = array<i32>} : memref<16x128xf32, #tpu.memory_space<vmem>>, vector<16x128xf32>,
    return
  }
  func.func @transform_0(%arg0: i32) -> (i32, i32) {
    %c0_i32 = arith.constant 0 : i32
    %c0_i32_0 = arith.constant 0 : i32
    return %arg0, %c0_i32 : i32, i32
  }
  func.func @transform_1(%arg0: i32) -> (i32, i32) {
    %c0_i32 = arith.constant 0 : i32
    %c0_i32_0 = arith.constant 0 : i32
    %c0_i32_1 = arith.constant 0 : i32
    return %c0_i32, %c0_i32_0 : i32, i32
  }
  func.func @transform_2(%arg0: i32) -> (i32, i32) {
    %c0_i32 = arith.constant 0 : i32
    %c0_i32_0 = arith.constant 0 : i32
    %c0_i32_1 = arith.constant 0 : i32
    return %c0_i32, %c0_i32_0 : i32, i32
  }
  func.func @transform_3(%arg0: i32) -> (i32, i32) {
    %c0_i32 = arith.constant 0 : i32
    %c0_i32_0 = arith.constant 0 : i32
    %c0_i32_1 = arith.constant 0 : i32
    return %c0_i32, %c0_i32_0 : i32, i32
  }
  func.func @transform_4(%arg0: i32) -> (i32, i32) {
    %c0_i32 = arith.constant 0 : i32
    %c0_i32_0 = arith.constant 0 : i32
    %c0_i32_1 = arith.constant 0 : i32
    return %c0_i32, %c0_i32_0 : i32, i32
  }
  func.func @transform_5(%arg0: i32) -> (i32, i32) {
    %c0_i32 = arith.constant 0 : i32
    %c0_i32_0 = arith.constant 0 : i32
    %c0_i32_1 = arith.constant 0 : i32
    return %c0_i32, %c0_i32_0 : i32, i32
  }
  func.func @transform_6(%arg0: i32) -> (i32, i32) {
    %c0_i32 = arith.constant 0 : i32
    %c0_i32_0 = arith.constant 0 : i32
    %c0_i32_1 = arith.constant 0 : i32
    return %c0_i32, %c0_i32_0 : i32, i32
  }
  func.func @transform_7(%arg0: i32) -> (i32, i32) {
    %c0_i32 = arith.constant 0 : i32
    %c0_i32_0 = arith.constant 0 : i32
    %c0_i32_1 = arith.constant 0 : i32
    return %c0_i32, %c0_i32_0 : i32, i32
  }
  func.func @transform_8(%arg0: i32) -> (i32, i32) {
    %c0_i32 = arith.constant 0 : i32
    %c0_i32_0 = arith.constant 0 : i32
    %c0_i32_1 = arith.constant 0 : i32
    return %c0_i32, %c0_i32_0 : i32, i32
  }
  func.func @transform_9(%arg0: i32) -> (i32, i32) {
    %c0_i32 = arith.constant 0 : i32
    %c0_i32_0 = arith.constant 0 : i32
    return %arg0, %c0_i32 : i32, i32
  }
}

</mosaic_0001>

<bundles_post_ra>
// kernel: fused_mlp_pallas.1
= control target key start
LH: loop header
LB: loop body
LE: loop exit
PB: predicated region body
PF: predicated region fallthrough
CT: control target
= control target key end

     0   :  { %14 = vsyncpa [#allocation3], 0  ;;  %s794_s0 = inlined_call_operand.vmem [shape: f32[16,128], index: 0, kind: input, shape index: {}]   ;;  %s795_s1 = inlined_call_operand.hbm [shape: bf16[128,128], index: 1, kind: input, shape index: {}]   ;;  %s796_s2 = inlined_call_operand.vmem [shape: bf16[1,128], index: 2, kind: input, shape index: {}]   ;;  %s797_s3 = inlined_call_operand.hbm [shape: bf16[128,128], index: 3, kind: input, shape index: {}]   ;;  %s798_s4 = inlined_call_operand.vmem [shape: bf16[1,128], index: 4, kind: input, shape index: {}]   ;;  %s799_s5 = inlined_call_operand.hbm [shape: bf16[128,128], index: 5, kind: input, shape index: {}]   ;;  %s800_s6 = inlined_call_operand.vmem [shape: bf16[1,128], index: 6, kind: input, shape index: {}]   ;;  %s801_s7 = inlined_call_operand.hbm [shape: bf16[128,128], index: 7, kind: input, shape index: {}]   ;;  %s802_s8 = inlined_call_operand.vmem [shape: bf16[1,128], index: 8, kind: input, shape index: {}]   ;;  %s803_s9 = inlined_call_operand.vmem [shape: f32[16,128], index: 9, kind: output, shape index: {}]  }
   0x1   :  { %15 = vsyncpa [#allocation5], 0 }
   0x2   :  { %16 = vsyncpa [#allocation8], 0  ;;  %s38_s11 = sshll.u32 %s797_s3, 4  ;;  %s702_s12 = smov [#allocation4]   ;;  %s39_s11 = int_to_ptr.hbm [resolvable:$true] %s38_s11 }
   0x3   :  { %s40_s13 = sshll.u32 %s702_s12, 4  ;;  %s23_s16 = sshll.u32 %s795_s1, 4  ;;  %s41_s13 = int_to_ptr.vmem [resolvable:$true] %s40_s13  ;;  %s24_s16 = int_to_ptr.hbm [resolvable:$true] %s23_s16 }
   0x4   :  { %s703_s17 = smov 64   ;;  %s704_s18 = smov 4  }
   0x5   :  { %46 = dma.hbm_to_vmem [thread:$0]  %s39_s11, 1024, %s41_s13, [#allocation5], %s703_s17, %s703_s17, %s704_s18  }
   0x6   :  { %s705_s19 = smov [#allocation2]   ;;  %s53_s23 = sshll.u32 %s799_s5, 4  ;;  %s54_s23 = int_to_ptr.hbm [resolvable:$true] %s53_s23 }
   0x7   :  { %s25_s20 = sshll.u32 %s705_s19, 4  ;;  %s68_s25 = sshll.u32 %s801_s7, 4  ;;  %s26_s20 = int_to_ptr.vmem [resolvable:$true] %s25_s20  ;;  %s69_s25 = int_to_ptr.hbm [resolvable:$true] %s68_s25 }
   0x8   :  { %31 = dma.hbm_to_vmem [thread:$0]  %s24_s16, 1024, %s26_s20, [#allocation3], %s703_s17, %s703_s17, %s704_s18  }
   0x9   :  { %s706_s26 = smov [#allocation6]   ;;  %s707_s1 = smov [#allocation7]  }
   0xa   :  { %s55_s27 = sshll.u32 %s706_s26, 4  ;;  %s70_s28 = sshll.u32 %s707_s1, 4  ;;  %s56_s27 = int_to_ptr.vmem [resolvable:$true] %s55_s27  ;;  %s71_s28 = int_to_ptr.vmem [resolvable:$true] %s70_s28 }
   0xb   :  { %61 = dma.hbm_to_vmem [thread:$0]  %s54_s23, 1024, %s56_s27, [#allocation5], %s703_s17, %s703_s17, %s704_s18  }
   0xc   :  { %76 = dma.hbm_to_vmem [thread:$0]  %s69_s25, 1024, %s71_s28, [#allocation8], %s703_s17, %s703_s17, %s704_s18  }
   0xd   :  { %696 = dma.done.wait [#allocation3], 1024  }
   0xe   :  { %697 = vsyncadd [#allocation3], 4294966272 }
   0xf   :  { %698 = dma.done.wait [#allocation5], 2048  }
  0x10   :  { %699 = vsyncadd [#allocation5], 4294965248 }
  0x11   :  { %700 = dma.done.wait [#allocation8], 1024  }
  0x12   :  { %701 = vsyncadd [#allocation8], 4294966272  ;;  %v569_v0 = vld [vmem:[#allocation2 + $0x38] sm:$0xff]  ;;  %v568_v1 = vld [vmem:[#allocation2 + $0x30] sm:$0xff] }
  0x13   :  { %165 = vmatpush.bf16.msra.mxu0 %v569_v0  ;;  %v577_v2 = vld [vmem:[#allocation4 + $0x38] sm:$0xff]  ;;  %v576_v3 = vld [vmem:[#allocation4 + $0x30] sm:$0xff]  ;;  %v567_v4 = vld [vmem:[#allocation2 + $0x28] sm:$0xff] }
  0x14   :  { %247 = vmatpush.bf16.msra.mxu1 %v577_v2  ;;  %v575_v5 = vld [vmem:[#allocation4 + $0x28] sm:$0xff]  ;;  %v566_v6 = vld [vmem:[#allocation2 + $0x20] sm:$0xff]  ;;  %v565_v8 = vld [vmem:[#allocation2 + $0x18] sm:$0xff] }
  0x15   :  { %v574_v7 = vld [vmem:[#allocation4 + $0x20] sm:$0xff]  ;;  %v573_v9 = vld [vmem:[#allocation4 + $0x18] sm:$0xff]  ;;  %v564_v10 = vld [vmem:[#allocation2 + $0x10] sm:$0xff] }
  0x16   :  { %v563_v11 = vld [vmem:[#allocation2 + $0x8] sm:$0xff]  ;;  %v562_v12 = vld [vmem:[#allocation2] sm:$0xff]  ;;  %v572_v16 = vld [vmem:[#allocation4 + $0x10] sm:$0xff] }
  0x17   :  { %166 = vmatpush.bf16.msra.mxu0 %v568_v1  ;;  %v95_v13 = vld [vmem:[%s794_s0] sm:$0xff]  ;;  %v96_v14 = vld [vmem:[%s794_s0 + $0x8] sm:$0xff]  ;;  %v585_v19 = vld [vmem:[#allocation6 + $0x38] sm:$0xff] }
  0x18   :  { %248 = vmatpush.bf16.msra.mxu1 %v576_v3  ;;  %v97_v15 = vpack.c.bf16 %v96_v14, %v95_v13  ;;  %v571_v17 = vld [vmem:[#allocation4 + $0x8] sm:$0xff]  ;;  %v570_v18 = vld [vmem:[#allocation4] sm:$0xff]  ;;  %329 = vmatpush.bf16.msra.mxu2 %v585_v19  ;;  %v584_v20 = vld [vmem:[#allocation6 + $0x30] sm:$0xff] }
  0x19   :  { %v583_v21 = vld [vmem:[#allocation6 + $0x28] sm:$0xff]  ;;  %v582_v22 = vld [vmem:[#allocation6 + $0x20] sm:$0xff]  ;;  %v581_v23 = vld [vmem:[#allocation6 + $0x18] sm:$0xff] }
  0x1a   :  { %v114_v24 = vld [vmem:[%s796_s2] sm:$0x1]  ;;  %v580_v32 = vld [vmem:[#allocation6 + $0x10] sm:$0xff]  ;;  %v579_v33 = vld [vmem:[#allocation6 + $0x8] sm:$0xff] }
  0x1b   :  { %167 = vmatpush.bf16.msra.mxu0 %v567_v4  ;;  %v115_v26 = vunpack.c.l.bf16 %v114_v24  ;;  %v578_v34 = vld [vmem:[#allocation6] sm:$0xff]  ;;  %v593_v35 = vld [vmem:[#allocation7 + $0x38] sm:$0xff]  ;;  %v592_v36 = vld [vmem:[#allocation7 + $0x30] sm:$0xff] }
  0x1c   :  { %249 = vmatpush.bf16.msra.mxu1 %v575_v5  ;;  %330 = vmatpush.bf16.msra.mxu2 %v584_v20  ;;  %v591_v37 = vld [vmem:[#allocation7 + $0x28] sm:$0xff]  ;;  %v590_v38 = vld [vmem:[#allocation7 + $0x20] sm:$0xff]  ;;  %v589_v39 = vld [vmem:[#allocation7 + $0x18] sm:$0xff] }
  0x1d   :  { %v116_v27 = vperm.slane %v115_v26, 0  ;;  %411 = vmatpush.bf16.msra.mxu3 %v593_v35  ;;  %v196_v40 = vld [vmem:[%s798_s4] sm:$0x1]  ;;  %v588_v48 = vld [vmem:[#allocation7 + $0x10] sm:$0xff]  ;;  %v587_v49 = vld [vmem:[#allocation7 + $0x8] sm:$0xff] }
  0x1e   :  { %v197_v42 = vunpack.c.l.bf16 %v196_v40  ;;  %v586_v50 = vld [vmem:[#allocation7] sm:$0xff] }
  0x1f   :  { %168 = vmatpush.bf16.msra.mxu0 %v566_v6  ;;  %v278_v51 = vld [vmem:[%s800_s6] sm:$0x1] }
  0x20   :  { %250 = vmatpush.bf16.msra.mxu1 %v574_v7  ;;  %331 = vmatpush.bf16.msra.mxu2 %v583_v21  ;;  %v198_v43 = vperm.slane %v197_v42, 0  ;;  %v279_v53 = vunpack.c.l.bf16 %v278_v51  ;;  %v360_v59 = vld [vmem:[%s802_s8] sm:$0x1] }
  0x21   :  { %412 = vmatpush.bf16.msra.mxu3 %v592_v36  ;;  %v361_v60 = vunpack.c.l.bf16 %v360_v59 }
  0x22   :  { %v280_v54 = vperm.slane %v279_v53, 0 }
  0x23   :  { %169 = vmatpush.bf16.msra.mxu0 %v565_v8  ;;  %v362_v61 = vperm.slane %v361_v60, 0 }
  0x24   :  { %251 = vmatpush.bf16.msra.mxu1 %v573_v9  ;;  %332 = vmatpush.bf16.msra.mxu2 %v582_v22 }
  0x25   :  { %413 = vmatpush.bf16.msra.mxu3 %v591_v37 }
  0x27   :  { %170 = vmatpush.bf16.msra.mxu0 %v564_v10 }
  0x28   :  { %252 = vmatpush.bf16.msra.mxu1 %v572_v16  ;;  %333 = vmatpush.bf16.msra.mxu2 %v581_v23 }
  0x29   :  { %414 = vmatpush.bf16.msra.mxu3 %v590_v38 }
  0x2b   :  { %171 = vmatpush.bf16.msra.mxu0 %v563_v11 }
  0x2c   :  { %253 = vmatpush.bf16.msra.mxu1 %v571_v17  ;;  %334 = vmatpush.bf16.msra.mxu2 %v580_v32 }
  0x2d   :  { %415 = vmatpush.bf16.msra.mxu3 %v589_v39 }
  0x2f   :  { %172 = vmatpush.bf16.msra.mxu0 %v562_v12 }
  0x30   :  { %254 = vmatpush.bf16.msra.mxu1 %v570_v18  ;;  %335 = vmatpush.bf16.msra.mxu2 %v579_v33 }
  0x31   :  { %416 = vmatpush.bf16.msra.mxu3 %v588_v48 }
  0x32   :  { %173 = vmatmul.bf16.vlgmr.msra.gmra.mxu0 %v97_v15 }
  0x34   :  { %336 = vmatpush.bf16.msra.mxu2 %v578_v34 }
  0x35   :  { %417 = vmatpush.bf16.msra.mxu3 %v587_v49 }
  0x39   :  { %418 = vmatpush.bf16.msra.mxu3 %v586_v50 }
  0xaf   :  { %v174_v25 = vpop.f32.mrf.mxu0 }
  0xb0   :  { %v175_v29 = vadd.f32 %v174_v25, %v116_v27 }
  0xb7   :  { %v176_v28 = vpop.f32.mrf.mxu0 }
  0xb8   :  { %v177_v30 = vadd.f32 %v176_v28, %v116_v27 }
  0xba   :  { %v179_v31 = vpack.c.bf16 %v177_v30, %v175_v29 }
  0xbc   :  { %255 = vmatmul.bf16.vlgmr.msra.gmra.mxu1 %v179_v31 }
 0x139   :  { %v256_v41 = vpop.f32.mrf.mxu1 }
 0x13a   :  { %v257_v45 = vadd.f32 %v256_v41, %v198_v43 }
 0x141   :  { %v258_v44 = vpop.f32.mrf.mxu1 }
 0x142   :  { %v259_v46 = vadd.f32 %v258_v44, %v198_v43 }
 0x144   :  { %v261_v47 = vpack.c.bf16 %v259_v46, %v257_v45 }
 0x146   :  { %337 = vmatmul.bf16.vlgmr.msra.gmra.mxu2 %v261_v47 }
 0x1c9   :  { %v338_v52 = vpop.f32.mrf.mxu2 }
 0x1ca   :  { %v339_v56 = vadd.f32 %v338_v52, %v280_v54 }
 0x1d1   :  { %v340_v55 = vpop.f32.mrf.mxu2 }
 0x1d2   :  { %v341_v57 = vadd.f32 %v340_v55, %v280_v54 }
 0x1d4   :  { %v343_v58 = vpack.c.bf16 %v341_v57, %v339_v56 }
 0x1d6   :  { %419 = vmatmul.bf16.vlgmr.msra.gmra.mxu3 %v343_v58 }
 0x259   :  { %v420_v62 = vpop.f32.mrf.mxu3 }
 0x25a   :  { %v421_v63 = vadd.f32 %v420_v62, %v362_v61 }
 0x25c   :  { %425 = vst [vmem:[%s803_s9] sm:$0xff] %v421_v63 }
 0x261   :  { %v422_v0 = vpop.f32.mrf.mxu3 }
 0x262   :  { %v423_v1 = vadd.f32 %v422_v0, %v362_v61 }
 0x264   :  { %426 = vst [vmem:[%s803_s9 + $0x8] sm:$0xff] %v423_v1 }
 0x265   :  { %431 = vsyncpa [#allocation3], 1 }
 0x266   :  { %432 = vsyncpa [#allocation5], 1 }
 0x267   :  { %433 = vsyncpa [#allocation8], 1 }

</bundles_post_ra>
